<compile_context>
chip_gen: v5e
topology: v5e:2x2
jax: 0.10.0
libtpu: 0.0.40
codegen_flags: <defaults>
</compile_context>

<pallas_src>
import jax
import jax.numpy as jnp
from jax.experimental import pallas as pl
from jax.experimental.pallas import tpu as pltpu

EMBEDDING_DIM = 8
AGE_BUCKET_COUNT = 10
GENDER_COUNT = 2
ITEM_COUNT = 500
USER_COUNT = 1000

CONCAT_DIM = EMBEDDING_DIM * 4   # 32
LANE = 128                       # vreg lane width


def _round_up(x, m):
    return ((x + m - 1) // m) * m


def _mlp_kernel(x_ref, w1_ref, b1_ref, w2_ref, b2_ref, w3_ref, b3_ref,
                w4_ref, b4_ref, o_ref):
    # Transposed tower: (features, TB) everywhere; batch lives on the lane axis.
    x = x_ref[...]                                                          # (32, TB) bf16
    # fc1 (+relu): bf16 MXU operands, f32 accumulate; bias/ReLU in f32.
    h1 = jnp.dot(w1_ref[...], x, preferred_element_type=jnp.float32) + b1_ref[...]
    h1 = jnp.maximum(h1, 0.0)                                               # (64, TB) f32
    # fc2 (+relu)
    h2 = jnp.dot(w2_ref[...], h1.astype(jnp.bfloat16),
                 preferred_element_type=jnp.float32) + b2_ref[...]
    h2 = jnp.maximum(h2, 0.0)                                               # (32, TB) f32
    # fc3 (+relu)
    h3 = jnp.dot(w3_ref[...], h2.astype(jnp.bfloat16),
                 preferred_element_type=jnp.float32) + b3_ref[...]
    h3 = jnp.maximum(h3, 0.0)                                               # (16, TB) f32
    # fc_output (16 -> 1): VPU multiply + sublane reduction.  A 1-row systolic pass would
    # waste 255/256 of an MXU tile, so this stays off the MXU (per perf review).
    logits = jnp.sum(h3 * w4_ref[...], axis=0, keepdims=True) + b4_ref[...]  # (1, TB) f32
    # Lane-dense sigmoid + unmasked (1, TB) store.
    o_ref[...] = jax.nn.sigmoid(logits)


def _const_spec(shape):
    ndim = len(shape)
    return pl.BlockSpec(shape, lambda i, _n=ndim: (0,) * _n)


def _batch_semantics(num_tiles):
    # v7x has 2 TensorCores/chip; plain "parallel" has measured near-zero codegen effect, so
    # request real core-parallel splitting of the batch grid there.  v5e/v6e are single-TC:
    # keep the known-good "parallel" semantics.
    kind = ""
    try:
        kind = jax.devices()[0].device_kind.lower()
    except Exception:
        pass
    if num_tiles > 1 and ("v7" in kind or "tpu7" in kind):
        return (pltpu.CORE_PARALLEL,)
    return ("parallel",)


def prep_mlp_params(params):
    """Transpose weights to PyTorch's (out, in) layout and cast the MXU operands to bf16.

    Biases become f32 column vectors (broadcast along the lane/batch axis in-kernel).
    The 16->1 head weight stays f32 (it is consumed by the VPU, not the MXU).
    """
    w1, b1, w2, b2, w3, b3, w4, b4 = params
    bf16 = jnp.bfloat16
    return (
        w1.T.astype(bf16), b1.reshape(-1, 1).astype(jnp.float32),   # (64, 32) bf16, (64, 1) f32
        w2.T.astype(bf16), b2.reshape(-1, 1).astype(jnp.float32),   # (32, 64) bf16, (32, 1) f32
        w3.T.astype(bf16), b3.reshape(-1, 1).astype(jnp.float32),   # (16, 32) bf16, (16, 1) f32
        w4.reshape(-1, 1).astype(jnp.float32),                      # (16, 1)  f32 (VPU path)
        b4.reshape(1, 1).astype(jnp.float32),                       # (1, 1)   f32
    )


def mlp_forward(x_t, mlp_params_t, *, block_rows=8192):
    """Runs fc1..fc_output on a (32, B) bf16 activation slab, batch tiled along lanes.

    VMEM @ TB=8192: ~6 MiB total -> fits v5e's 16 MiB scoped default and v7x's 64 MiB
    physical VMEM without raising vmem_limit_bytes.
    """
    D, B = x_t.shape
    # Adaptive tile choice (review): never pad the batch by more than one 128-lane group
    # per tile.  TB must be a multiple of 128 so multi-tile lane blocks stay aligned.
    num_tiles = max(1, -(-B // block_rows))
    TB = _round_up(-(-B // num_tiles), LANE)
    B_pad = TB * num_tiles
    if B_pad != B:
        # Zero-padded tail lanes produce finite logits; sliced off below.
        x_t = jnp.pad(x_t, ((0, 0), (0, B_pad - B)))

    w1, b1, w2, b2, w3, b3, w4, b4 = mlp_params_t

    out = pl.pallas_call(
        _mlp_kernel,
        out_shape=jax.ShapeDtypeStruct((1, B_pad), jnp.float32),
        grid_spec=pltpu.PrefetchScalarGridSpec(
            num_scalar_prefetch=0,
            grid=(num_tiles,),
            in_specs=[
                pl.BlockSpec((D, TB), lambda i: (0, i)),   # pipelined bf16 activation tile
                # Weights/biases: constant index map -> VMEM resident.
                # (pl.Buffered(1) considered per review; skipped - <20 KiB of weights makes
                #  the default double buffer negligible at this TB.)
                _const_spec(w1.shape), _const_spec(b1.shape),
                _const_spec(w2.shape), _const_spec(b2.shape),
                _const_spec(w3.shape), _const_spec(b3.shape),
                _const_spec(w4.shape), _const_spec(b4.shape),
            ],
            out_specs=pl.BlockSpec((1, TB), lambda i: (0, i)),   # lane-dense output row
        ),
        compiler_params=pltpu.CompilerParams(
            dimension_semantics=_batch_semantics(num_tiles),
        ),
    )(x_t, w1, b1, w2, b2, w3, b3, w4, b4)
    return out[0, :B].reshape(B, 1)


def init_params(key):
    """Deterministic synthetic parameters matching the PyTorch module shapes ((in,out) layout)."""
    keys = jax.random.split(key, 12)
    scale = 0.1
    user_emb = jax.random.normal(keys[0], (USER_COUNT, EMBEDDING_DIM), jnp.float32) * scale
    item_emb = jax.random.normal(keys[1], (ITEM_COUNT, EMBEDDING_DIM), jnp.float32) * scale
    age_emb = jax.random.normal(keys[2], (AGE_BUCKET_COUNT, EMBEDDING_DIM), jnp.float32) * scale
    gender_emb = jax.random.normal(keys[3], (GENDER_COUNT, EMBEDDING_DIM), jnp.float32) * scale

    def linear(kw, kb, fan_in, fan_out):
        # (in, out) layout; equivalent to PyTorch's x @ W.T + b with W (out, in).
        w = jax.random.normal(kw, (fan_in, fan_out), jnp.float32) * (1.0 / jnp.sqrt(fan_in))
        b = jax.random.normal(kb, (1, fan_out), jnp.float32) * 0.01
        return w, b

    w1, b1 = linear(keys[4], keys[5], CONCAT_DIM, 64)
    w2, b2 = linear(keys[6], keys[7], 64, 32)
    w3, b3 = linear(keys[8], keys[9], 32, 16)
    w4, b4 = linear(keys[10], keys[11], 16, 1)

    return (user_emb, item_emb, age_emb, gender_emb), (w1, b1, w2, b2, w3, b3, w4, b4)


def recommendation_forward(user_input, item_input, age_input, gender_input,
                           emb_tables, mlp_params_t, *, block_rows=8192):
    user_emb, item_emb, age_emb, gender_emb = emb_tables
    # Embedding lookups (gather) + concat stay in XLA; the handoff into the kernel is a bf16
    # (32, B) batch-on-lanes slab (half the HBM bytes of an f32 (B, 32) handoff).
    # TODO(synk): fuse the 4 embedding gathers into the kernel (scalar-prefetched indices,
    # ~48 KiB of tables resident in VMEM) to remove this HBM round trip at very large B.
    feats = jnp.concatenate(
        [jnp.take(user_emb, user_input, axis=0),
         jnp.take(item_emb, item_input, axis=0),
         jnp.take(age_emb, age_input, axis=0),
         jnp.take(gender_emb, gender_input, axis=0)], axis=1)            # (B, 32) f32
    x_t = feats.astype(jnp.bfloat16).T                                   # (32, B) bf16
    return mlp_forward(x_t, mlp_params_t, block_rows=block_rows)


def _ref_forward(user_input, item_input, age_input, gender_input, emb_tables, mlp_params):
    """Plain-JAX f32 reference with the original (in,out) parameters."""
    ue, ie, ae, ge = emb_tables
    w1, b1, w2, b2, w3, b3, w4, b4 = mlp_params
    c = jnp.concatenate([ue[user_input], ie[item_input],
                         ae[age_input], ge[gender_input]], axis=1)
    h = jnp.maximum(c @ w1 + b1, 0.0)
    h = jnp.maximum(h @ w2 + b2, 0.0)
    h = jnp.maximum(h @ w3 + b3, 0.0)
    return jax.nn.sigmoid(h @ w4 + b4)


if __name__ == "__main__":
    key = jax.random.PRNGKey(0)
    pkey, ukey, ikey, akey, gkey = jax.random.split(key, 5)

    emb_tables, mlp_params = init_params(pkey)
    mlp_params_t = prep_mlp_params(mlp_params)

    # bf16 MXU operands drift slightly from the f32 PyTorch-style reference -> loose tolerance.
    ATOL, RTOL = 2e-2, 2e-2

    # --- Small batch (matches the original test): single 128-lane tile, grid=(1,). ---
    B = 8
    user_input = jax.random.randint(ukey, (B,), 0, USER_COUNT, dtype=jnp.int32)
    item_input = jax.random.randint(ikey, (B,), 0, ITEM_COUNT, dtype=jnp.int32)
    age_input = jax.random.randint(akey, (B,), 0, AGE_BUCKET_COUNT, dtype=jnp.int32)
    gender_input = jax.random.randint(gkey, (B,), 0, GENDER_COUNT, dtype=jnp.int32)

    out = recommendation_forward(user_input, item_input, age_input, gender_input,
                                 emb_tables, mlp_params_t)
    out = jax.block_until_ready(out)
    ref = jax.block_until_ready(
        _ref_forward(user_input, item_input, age_input, gender_input, emb_tables, mlp_params))
    assert out.shape == (B, 1), out.shape
    assert jnp.allclose(out, ref, atol=ATOL, rtol=RTOL), float(jnp.max(jnp.abs(out - ref)))

    # --- Larger, non-multiple-of-tile batch: exercises the multi-tile grid, adaptive TB
    #     and tail-lane padding (block_rows=128 -> 3 tiles of 128 lanes for B=300). ---
    B2 = 300
    k2 = jax.random.split(key, 9)
    u2 = jax.random.randint(k2[5], (B2,), 0, USER_COUNT, dtype=jnp.int32)
    i2 = jax.random.randint(k2[6], (B2,), 0, ITEM_COUNT, dtype=jnp.int32)
    a2 = jax.random.randint(k2[7], (B2,), 0, AGE_BUCKET_COUNT, dtype=jnp.int32)
    g2 = jax.random.randint(k2[8], (B2,), 0, GENDER_COUNT, dtype=jnp.int32)

    out2 = recommendation_forward(u2, i2, a2, g2, emb_tables, mlp_params_t, block_rows=128)
    out2 = jax.block_until_ready(out2)
    ref2 = jax.block_until_ready(_ref_forward(u2, i2, a2, g2, emb_tables, mlp_params))
    assert out2.shape == (B2, 1), out2.shape
    assert jnp.allclose(out2, ref2, atol=ATOL, rtol=RTOL), float(jnp.max(jnp.abs(out2 - ref2)))

    print("KERNEL_OK")
</pallas_src>

<mosaic_0001>
module attributes {stable_mosaic.version = 11 : i64} {
  func.func @_mlp_kernel(%arg0: i32, %arg1: memref<32x128xbf16, #tpu.memory_space<vmem>>, %arg2: memref<64x32xbf16, #tpu.memory_space<vmem>>, %arg3: memref<64x1xf32, #tpu.memory_space<vmem>>, %arg4: memref<32x64xbf16, #tpu.memory_space<vmem>>, %arg5: memref<32x1xf32, #tpu.memory_space<vmem>>, %arg6: memref<16x32xbf16, #tpu.memory_space<vmem>>, %arg7: memref<16x1xf32, #tpu.memory_space<vmem>>, %arg8: memref<16x1xf32, #tpu.memory_space<vmem>>, %arg9: memref<1x1xf32, #tpu.memory_space<vmem>>, %arg10: memref<1x128xf32, #tpu.memory_space<vmem>>) attributes {dimension_semantics = [#tpu.dimension_semantics<parallel>], iteration_bounds = array<i64: 1>, scalar_prefetch = 0 : i64, scratch_operands = 0 : i64, tpu.core_type = #tpu.core_type<tc>, window_params = [{transform_indices = @transform_0, window_bounds = array<i64: 32, 128>}, {pipeline_mode = #tpu.pipeline_mode<synchronous>, transform_indices = @transform_1, window_bounds = array<i64: 64, 32>}, {pipeline_mode = #tpu.pipeline_mode<synchronous>, transform_indices = @transform_2, window_bounds = array<i64: 64, 1>}, {pipeline_mode = #tpu.pipeline_mode<synchronous>, transform_indices = @transform_3, window_bounds = array<i64: 32, 64>}, {pipeline_mode = #tpu.pipeline_mode<synchronous>, transform_indices = @transform_4, window_bounds = array<i64: 32, 1>}, {pipeline_mode = #tpu.pipeline_mode<synchronous>, transform_indices = @transform_5, window_bounds = array<i64: 16, 32>}, {pipeline_mode = #tpu.pipeline_mode<synchronous>, transform_indices = @transform_6, window_bounds = array<i64: 16, 1>}, {pipeline_mode = #tpu.pipeline_mode<synchronous>, transform_indices = @transform_7, window_bounds = array<i64: 16, 1>}, {pipeline_mode = #tpu.pipeline_mode<synchronous>, transform_indices = @transform_8, window_bounds = array<i64: 1, 1>}, {transform_indices = @transform_9, window_bounds = array<i64: 1, 128>}]} {
    %c0 = arith.constant 0 : index
    %c0_0 = arith.constant 0 : index
    %0 = vector.load %arg1[%c0, %c0_0] : memref<32x128xbf16, #tpu.memory_space<vmem>>, vector<32x128xbf16>
    %c0_1 = arith.constant 0 : index
    %c0_2 = arith.constant 0 : index
    %1 = vector.load %arg2[%c0_1, %c0_2] : memref<64x32xbf16, #tpu.memory_space<vmem>>, vector<64x32xbf16>
    %cst = arith.constant dense<0.000000e+00> : vector<64x128xf32>
    %2 = tpu.matmul %1, %0, %cst {dimension_numbers = #tpu.dot_dimension_numbers<[1], [0], [0], [1], [0, 0, 1, 1], [], []>} : vector<64x32xbf16>, vector<32x128xbf16>, vector<64x128xf32> -> vector<64x128xf32>
    %c0_3 = arith.constant 0 : index
    %c0_4 = arith.constant 0 : index
    %3 = vector.load %arg3[%c0_3, %c0_4] : memref<64x1xf32, #tpu.memory_space<vmem>>, vector<64x1xf32>
    %4 = vector.broadcast %3 : vector<64x1xf32> to vector<64x128xf32>
    %5 = arith.addf %2, %4 : vector<64x128xf32>
    %cst_5 = arith.constant 0.000000e+00 : f32
    %6 = vector.broadcast %cst_5 : f32 to vector<64x128xf32>
    %7 = arith.maximumf %5, %6 : vector<64x128xf32>
    %c0_6 = arith.constant 0 : index
    %c0_7 = arith.constant 0 : index
    %8 = vector.load %arg4[%c0_6, %c0_7] : memref<32x64xbf16, #tpu.memory_space<vmem>>, vector<32x64xbf16>
    %9 = arith.truncf %7 : vector<64x128xf32> to vector<64x128xbf16>
    %cst_8 = arith.constant dense<0.000000e+00> : vector<32x128xf32>
    %10 = tpu.matmul %8, %9, %cst_8 {dimension_numbers = #tpu.dot_dimension_numbers<[1], [0], [0], [1], [0, 0, 1, 1], [], []>} : vector<32x64xbf16>, vector<64x128xbf16>, vector<32x128xf32> -> vector<32x128xf32>
    %c0_9 = arith.constant 0 : index
    %c0_10 = arith.constant 0 : index
    %11 = vector.load %arg5[%c0_9, %c0_10] : memref<32x1xf32, #tpu.memory_space<vmem>>, vector<32x1xf32>
    %12 = vector.broadcast %11 : vector<32x1xf32> to vector<32x128xf32>
    %13 = arith.addf %10, %12 : vector<32x128xf32>
    %cst_11 = arith.constant 0.000000e+00 : f32
    %14 = vector.broadcast %cst_11 : f32 to vector<32x128xf32>
    %15 = arith.maximumf %13, %14 : vector<32x128xf32>
    %c0_12 = arith.constant 0 : index
    %c0_13 = arith.constant 0 : index
    %16 = vector.load %arg6[%c0_12, %c0_13] : memref<16x32xbf16, #tpu.memory_space<vmem>>, vector<16x32xbf16>
    %17 = arith.truncf %15 : vector<32x128xf32> to vector<32x128xbf16>
    %cst_14 = arith.constant dense<0.000000e+00> : vector<16x128xf32>
    %18 = tpu.matmul %16, %17, %cst_14 {dimension_numbers = #tpu.dot_dimension_numbers<[1], [0], [0], [1], [0, 0, 1, 1], [], []>} : vector<16x32xbf16>, vector<32x128xbf16>, vector<16x128xf32> -> vector<16x128xf32>
    %c0_15 = arith.constant 0 : index
    %c0_16 = arith.constant 0 : index
    %19 = vector.load %arg7[%c0_15, %c0_16] : memref<16x1xf32, #tpu.memory_space<vmem>>, vector<16x1xf32>
    %20 = vector.broadcast %19 : vector<16x1xf32> to vector<16x128xf32>
    %21 = arith.addf %18, %20 : vector<16x128xf32>
    %cst_17 = arith.constant 0.000000e+00 : f32
    %22 = vector.broadcast %cst_17 : f32 to vector<16x128xf32>
    %23 = arith.maximumf %21, %22 : vector<16x128xf32>
    %c0_18 = arith.constant 0 : index
    %c0_19 = arith.constant 0 : index
    %24 = vector.load %arg8[%c0_18, %c0_19] : memref<16x1xf32, #tpu.memory_space<vmem>>, vector<16x1xf32>
    %25 = vector.broadcast %24 : vector<16x1xf32> to vector<16x128xf32>
    %26 = arith.mulf %23, %25 : vector<16x128xf32>
    %cst_20 = arith.constant dense<0.000000e+00> : vector<128xf32>
    %27 = vector.multi_reduction <add>, %26, %cst_20 [0] : vector<16x128xf32> to vector<128xf32>
    %28 = vector.shape_cast %27 : vector<128xf32> to vector<1x128xf32>
    %c0_21 = arith.constant 0 : index
    %c0_22 = arith.constant 0 : index
    %29 = vector.load %arg9[%c0_21, %c0_22] : memref<1x1xf32, #tpu.memory_space<vmem>>, vector<1x1xf32>
    %30 = vector.broadcast %29 : vector<1x1xf32> to vector<1x128xf32>
    %31 = arith.addf %28, %30 : vector<1x128xf32>
    %32 = arith.negf %31 : vector<1x128xf32>
    %33 = math.exp %32 : vector<1x128xf32>
    %cst_23 = arith.constant 1.000000e+00 : f32
    %34 = vector.broadcast %cst_23 : f32 to vector<1x128xf32>
    %35 = arith.addf %34, %33 : vector<1x128xf32>
    %36 = arith.divf %34, %35 : vector<1x128xf32>
    %c0_24 = arith.constant 0 : index
    %c0_25 = arith.constant 0 : index
    %37 = vector.load %arg10[%c0_24, %c0_25] : memref<1x128xf32, #tpu.memory_space<vmem>>, vector<1x128xf32>
    tpu.vector_store %arg10[%c0_24, %c0_25], %36 {strides = array<i32>} : memref<1x128xf32, #tpu.memory_space<vmem>>, vector<1x128xf32>,
    return
  }
  func.func @transform_0(%arg0: i32) -> (i32, i32) {
    %c0_i32 = arith.constant 0 : i32
    %c0_i32_0 = arith.constant 0 : i32
    return %c0_i32, %arg0 : i32, i32
  }
  func.func @transform_1(%arg0: i32) -> (i32, i32) {
    %c0_i32 = arith.constant 0 : i32
    %c0_i32_0 = arith.constant 0 : i32
    %c0_i32_1 = arith.constant 0 : i32
    return %c0_i32, %c0_i32_0 : i32, i32
  }
  func.func @transform_2(%arg0: i32) -> (i32, i32) {
    %c0_i32 = arith.constant 0 : i32
    %c0_i32_0 = arith.constant 0 : i32
    %c0_i32_1 = arith.constant 0 : i32
    return %c0_i32, %c0_i32_0 : i32, i32
  }
  func.func @transform_3(%arg0: i32) -> (i32, i32) {
    %c0_i32 = arith.constant 0 : i32
    %c0_i32_0 = arith.constant 0 : i32
    %c0_i32_1 = arith.constant 0 : i32
    return %c0_i32, %c0_i32_0 : i32, i32
  }
  func.func @transform_4(%arg0: i32) -> (i32, i32) {
    %c0_i32 = arith.constant 0 : i32
    %c0_i32_0 = arith.constant 0 : i32
    %c0_i32_1 = arith.constant 0 : i32
    return %c0_i32, %c0_i32_0 : i32, i32
  }
  func.func @transform_5(%arg0: i32) -> (i32, i32) {
    %c0_i32 = arith.constant 0 : i32
    %c0_i32_0 = arith.constant 0 : i32
    %c0_i32_1 = arith.constant 0 : i32
    return %c0_i32, %c0_i32_0 : i32, i32
  }
  func.func @transform_6(%arg0: i32) -> (i32, i32) {
    %c0_i32 = arith.constant 0 : i32
    %c0_i32_0 = arith.constant 0 : i32
    %c0_i32_1 = arith.constant 0 : i32
    return %c0_i32, %c0_i32_0 : i32, i32
  }
  func.func @transform_7(%arg0: i32) -> (i32, i32) {
    %c0_i32 = arith.constant 0 : i32
    %c0_i32_0 = arith.constant 0 : i32
    %c0_i32_1 = arith.constant 0 : i32
    return %c0_i32, %c0_i32_0 : i32, i32
  }
  func.func @transform_8(%arg0: i32) -> (i32, i32) {
    %c0_i32 = arith.constant 0 : i32
    %c0_i32_0 = arith.constant 0 : i32
    %c0_i32_1 = arith.constant 0 : i32
    return %c0_i32, %c0_i32_0 : i32, i32
  }
  func.func @transform_9(%arg0: i32) -> (i32, i32) {
    %c0_i32 = arith.constant 0 : i32
    %c0_i32_0 = arith.constant 0 : i32
    return %c0_i32, %arg0 : i32, i32
  }
}

</mosaic_0001>

<bundles_post_ra>
// kernel: tpu_custom_call.1
= control target key start
LH: loop header
LB: loop body
LE: loop exit
PB: predicated region body
PF: predicated region fallthrough
CT: control target
= control target key end

     0   :  { %s583_s0 = inlined_call_operand.vmem [shape: bf16[32,128], index: 0, kind: input, shape index: {}]   ;;  %s584_s1 = inlined_call_operand.vmem [shape: bf16[64,32], index: 1, kind: input, shape index: {}]   ;;  %s585_s2 = inlined_call_operand.vmem [shape: f32[64,1], index: 2, kind: input, shape index: {}]   ;;  %s586_s3 = inlined_call_operand.vmem [shape: bf16[32,64], index: 3, kind: input, shape index: {}]   ;;  %s587_s4 = inlined_call_operand.vmem [shape: f32[32,1], index: 4, kind: input, shape index: {}]   ;;  %s588_s5 = inlined_call_operand.vmem [shape: bf16[16,32], index: 5, kind: input, shape index: {}]   ;;  %s589_s6 = inlined_call_operand.vmem [shape: f32[16,1], index: 6, kind: input, shape index: {}]   ;;  %s590_s7 = inlined_call_operand.vmem [shape: f32[16,1], index: 7, kind: input, shape index: {}]   ;;  %s591_s8 = inlined_call_operand.<no memory space> [shape: f32[1,1], index: 8, kind: input, shape index: {}]   ;;  %s592_s9 = inlined_call_operand.hbm [shape: f32[1,128], index: 9, kind: output, shape index: {}]  }
   0x1   :  { %v14_v0 = vstv %s591_s8 }
   0x2   :  { %15 = vst [vmem:[#allocation2] sm:$0x1] %v14_v0 }
   0x3   :  { %v54_v1 = vld [vmem:[%s585_s2 + $0x30] sm:$0xff]  ;;  %v400_v2 = vld [vmem:[%s583_s0 + $0x8] sm:$0xff]  ;;  %v52_v3 = vld [vmem:[%s585_s2 + $0x20] sm:$0xff]  ;;  %v445_v4 = vmov 0   ;;  %vm128_vm0 = vcmask 261120  }
   0x4   :  { %412 = vset.pattern.permute.xlu0 %v445_v4  ;;  %413 = vset.pattern.permute.xlu1 %v445_v4  ;;  %v399_v5 = vld [vmem:[%s583_s0] sm:$0xff]  ;;  %v403_v6 = vld [vmem:[%s584_s1 + $0x10] sm:$0xff] }
   0x5   :  { %88 = vperm.xlu0 %412, %v54_v1   ;;  %408 = vmatpush.bf16.msra.mxu3 %v400_v2  ;;  %v50_v7 = vld [vmem:[%s585_s2 + $0x10] sm:$0xff]  ;;  %v401_v8 = vld [vmem:[%s584_s1] sm:$0xff] }
   0x6   :  { %78 = vperm.xlu1 %413, %v52_v3   ;;  %147 = vmatpush.bf16.msra.mxu0 %v400_v2 }
   0x7   :  { %414 = vset.pattern.permute.xlu2 %v445_v4 }
   0x8   :  { %68 = vperm.xlu2 %414, %v50_v7  }
   0x9   :  { %409 = vmatpush.bf16.msra.mxu3 %v399_v5 }
   0xa   :  { %16 = vsyncpa [#allocation4], 0  ;;  %v55_v9 = vld [vmem:[%s585_s2 + $0x38] sm:$0xff]  ;;  %148 = vmatpush.bf16.msra.mxu0 %v399_v5  ;;  %v53_v10 = vld [vmem:[%s585_s2 + $0x28] sm:$0xff]  ;;  %vm220_vm1 = vcmask 523264   ;;  %s346_s12 = sshll.u32 %s592_s9, 4  ;;  %s347_s12 = int_to_ptr.hbm [resolvable:$true] %s346_s12 }
   0xb   :  { %v51_v11 = vld [vmem:[%s585_s2 + $0x18] sm:$0xff]  ;;  %v48_v12 = vld [vmem:[%s585_s2] sm:$0xff]  ;;  %v49_v13 = vld [vmem:[%s585_s2 + $0x8] sm:$0xff] }
   0xc   :  { %381 = vmatmul.msk.bf16.vlgmr.msra.gmra.mxu3 %vm128_vm0, %v403_v6  ;;  %v188_v14 = vld [vmem:[%s587_s4 + $0x10] sm:$0xff]  ;;  %v404_v15 = vld [vmem:[%s584_s1 + $0x18] sm:$0xff]  ;;  %v402_v16 = vld [vmem:[%s584_s1 + $0x8] sm:$0xff] }
   0xd   :  { %93 = vperm.xlu0 %412, %v55_v9   ;;  %379 = vmatmul.msk.bf16.vlgmr.msra.gmra.mxu0 %vm128_vm0, %v401_v8  ;;  %v189_v17 = vld [vmem:[%s587_s4 + $0x18] sm:$0xff]  ;;  %v186_v18 = vld [vmem:[%s587_s4] sm:$0xff]  ;;  %v187_v19 = vld [vmem:[%s587_s4 + $0x8] sm:$0xff] }
   0xe   :  { %83 = vperm.xlu1 %413, %v53_v10   ;;  %v254_v20 = vld [vmem:[%s589_s6] sm:$0xff]  ;;  %v255_v21 = vld [vmem:[%s589_s6 + $0x8] sm:$0xff] }
   0xf   :  { %v290_v22 = vld [vmem:[%s590_s7] sm:$0xff]  ;;  %v291_v23 = vld [vmem:[%s590_s7 + $0x8] sm:$0xff] }
  0x10   :  { %73 = vperm.xlu2 %414, %v51_v11   ;;  %v311_v24 = vld [vmem:[#allocation2] sm:$0x1]  ;;  %v406_v62 = vld [vmem:[%s586_s3 + $0x8] sm:$0xff] }
  0x11   :  { %v405_v61 = vld [vmem:[%s586_s3] sm:$0xff] }
  0x15   :  { %58 = vperm.xlu0 %412, %v48_v12  }
  0x16   :  { %63 = vperm.xlu1 %413, %v49_v13  }
  0x18   :  { %202 = vperm.xlu2 %414, %v188_v14  }
  0x1c   :  { %382 = vmatmul.msk.bf16.gmra.mxu3 %vm128_vm0, %v404_v15 }
  0x1d   :  { %207 = vperm.xlu0 %412, %v189_v17   ;;  %380 = vmatmul.msk.bf16.gmra.mxu0 %vm128_vm0, %v402_v16  ;;  %v407_v17 = vld [vmem:[%s588_s5] sm:$0xff]  ;;  %s446_s5 = smov [#allocation3]  }
  0x1e   :  { %192 = vperm.xlu1 %413, %v186_v18   ;;  %s344_s30 = sshll.u32 %s446_s5, 4  ;;  %s345_s30 = int_to_ptr.vmem [resolvable:$true] %s344_s30 }
  0x20   :  { %197 = vperm.xlu2 %414, %v187_v19  }
  0x25   :  { %258 = vperm.xlu0 %412, %v254_v20  }
  0x26   :  { %263 = vperm.xlu1 %413, %v255_v21  }
  0x28   :  { %294 = vperm.xlu2 %414, %v290_v22  }
  0x2d   :  { %299 = vperm.xlu0 %412, %v291_v23  }
  0x2e   :  { %314 = vperm.xlu1 %413, %v311_v24  }
  0x62   :  { %v69_v33 = vpop.permute.xlu2 %68 }
  0x6a   :  { %v74_v44 = vpop.permute.xlu2 %73 }
  0x72   :  { %v203_v1 = vpop.permute.xlu2 %202 }
  0x77   :  { %v89_v29 = vpop.permute.xlu0 %88 }
  0x78   :  { %v79_v30 = vpop.permute.xlu1 %78 }
  0x7a   :  { %v198_v3 = vpop.permute.xlu2 %197 }
  0x7f   :  { %v94_v34 = vpop.permute.xlu0 %93 }
  0x80   :  { %v84_v35 = vpop.permute.xlu1 %83 }
  0x87   :  { %v59_v49 = vpop.permute.xlu0 %58 }
  0x88   :  { %v64_v51 = vpop.permute.xlu1 %63 }
  0x8a   :  { %v150_v25 = vpop.f32.mrf.mxu0 }
  0x8b   :  { %v151_v52 = vadd.f32 %v150_v25, %v59_v49 }
  0x8d   :  { %v170_v57 = vmax.f32 %v151_v52, 0.0 }
  0x8f   :  { %v160_v26 = vpop.f32.mrf.mxu3  ;;  %v208_v5 = vpop.permute.xlu0 %207 }
  0x90   :  { %v161_v41 = vadd.f32 %v160_v26, %v79_v30  ;;  %v193_v9 = vpop.permute.xlu1 %192 }
  0x92   :  { %v152_v27 = vpop.f32.mrf.mxu0  ;;  %v174_v50 = vmax.f32 %v161_v41, 0.0 }
  0x93   :  { %v153_v53 = vadd.f32 %v152_v27, %v64_v51  ;;  %v295_v27 = vpop.permute.xlu2 %294 }
  0x95   :  { %v171_v58 = vmax.f32 %v153_v53, 0.0 }
  0x97   :  { %v162_v28 = vpop.f32.mrf.mxu3  ;;  %v182_v60 = vpack.c.bf16 %v171_v58, %v170_v57  ;;  %v259_v19 = vpop.permute.xlu0 %258 }
  0x98   :  { %v163_v38 = vadd.f32 %v162_v28, %v84_v35  ;;  %v264_v21 = vpop.permute.xlu1 %263 }
  0x9a   :  { %v155_v31 = vpop.f32.mrf.mxu0  ;;  %v175_v45 = vmax.f32 %v163_v38, 0.0 }
  0x9b   :  { %v156_v46 = vadd.f32 %v155_v31, %v69_v33 }
  0x9c   :  { %v184_v56 = vpack.c.bf16 %v175_v45, %v174_v50 }
  0x9d   :  { %v172_v54 = vmax.f32 %v156_v46, 0.0 }
  0x9f   :  { %v165_v32 = vpop.f32.mrf.mxu3  ;;  %v300_v26 = vpop.permute.xlu0 %299 }
  0xa0   :  { %v166_v36 = vadd.f32 %v165_v32, %v89_v29  ;;  %v315_v35 = vpop.permute.xlu1 %314 }
  0xa2   :  { %v157_v40 = vpop.f32.mrf.mxu0  ;;  %v176_v42 = vmax.f32 %v166_v36, 0.0 }
  0xa3   :  { %v158_v47 = vadd.f32 %v157_v40, %v74_v44 }
  0xa5   :  { %v173_v55 = vmax.f32 %v158_v47, 0.0 }
  0xa7   :  { %v167_v37 = vpop.f32.mrf.mxu3  ;;  %v183_v59 = vpack.c.bf16 %v173_v55, %v172_v54 }
  0xa8   :  { %v168_v39 = vadd.f32 %v167_v37, %v94_v34  ;;  %v317_v37 = vperm.slane %v315_v35, 0 }
  0xaa   :  { %v177_v43 = vmax.f32 %v168_v39, 0.0 }
  0xac   :  { %v185_v48 = vpack.c.bf16 %v177_v43, %v176_v42 }
  0xae   :  { %231 = vmatpush.bf16.msra.mxu1 %v185_v48 }
  0xb2   :  { %232 = vmatpush.bf16.msra.mxu1 %v184_v56 }
  0xb6   :  { %233 = vmatpush.bf16.msra.mxu1 %v183_v59 }
  0xba   :  { %234 = vmatpush.bf16.msra.mxu1 %v182_v60 }
  0xbd   :  { %391 = vmatmul.msk.bf16.vlgmr.msra.gmra.mxu1 %vm220_vm1, %v405_v61 }
  0xcd   :  { %392 = vmatmul.msk.bf16.gmra.mxu1 %vm220_vm1, %v406_v62 }
 0x13a   :  { %v236_v63 = vpop.f32.mrf.mxu1 }
 0x13b   :  { %v237_v10 = vadd.f32 %v236_v63, %v193_v9 }
 0x13d   :  { %v246_v15 = vmax.f32 %v237_v10, 0.0 }
 0x142   :  { %v238_v0 = vpop.f32.mrf.mxu1 }
 0x143   :  { %v239_v7 = vadd.f32 %v238_v0, %v198_v3 }
 0x145   :  { %v247_v13 = vmax.f32 %v239_v7, 0.0 }
 0x147   :  { %v252_v16 = vpack.c.bf16 %v247_v13, %v246_v15 }
 0x14a   :  { %v241_v2 = vpop.f32.mrf.mxu1 }
 0x14b   :  { %v242_v4 = vadd.f32 %v241_v2, %v203_v1 }
 0x14d   :  { %v248_v11 = vmax.f32 %v242_v4, 0.0 }
 0x152   :  { %v243_v6 = vpop.f32.mrf.mxu1 }
 0x153   :  { %v244_v8 = vadd.f32 %v243_v6, %v208_v5 }
 0x155   :  { %v249_v12 = vmax.f32 %v244_v8, 0.0 }
 0x157   :  { %v253_v14 = vpack.c.bf16 %v249_v12, %v248_v11 }
 0x159   :  { %280 = vmatpush.bf16.msra.mxu2 %v253_v14 }
 0x15d   :  { %281 = vmatpush.bf16.msra.mxu2 %v252_v16 }
 0x160   :  { %397 = vmatmul.msk.bf16.vlgmr.msra.gmra.mxu2 %vm128_vm0, %v407_v17 }
 0x1e3   :  { %v283_v18 = vpop.f32.mrf.mxu2 }
 0x1e4   :  { %v284_v20 = vadd.f32 %v283_v18, %v259_v19 }
 0x1e6   :  { %v288_v23 = vmax.f32 %v284_v20, 0.0 }
 0x1e8   :  { %v302_v28 = vmul.f32 %v295_v27, %v288_v23 }
 0x1eb   :  { %v285_v22 = vpop.f32.mrf.mxu2 }
 0x1ec   :  { %v286_v24 = vadd.f32 %v285_v22, %v264_v21 }
 0x1ee   :  { %v289_v25 = vmax.f32 %v286_v24, 0.0 }
 0x1f0   :  { %v303_v29 = vmul.f32 %v300_v26, %v289_v25 }
 0x1f2   :  { %v304_v30 = vadd.f32 %v303_v29, %v302_v28 }
 0x1f4   :  { %v305_v31 = vrot.slane %v304_v30, 4 }
 0x1f6   :  { %v306_v32 = vadd.f32 %v305_v31, %v304_v30 }
 0x1f8   :  { %v307_v33 = vrot.slane %v306_v32, 2 }
 0x1fa   :  { %v308_v34 = vadd.f32 %v307_v33, %v306_v32 }
 0x1fc   :  { %v309_v36 = vrot.slane %v308_v34, 1 }
 0x1fe   :  { %v310_v38 = vadd.f32 %v309_v36, %v308_v34 }
 0x200   :  { %v318_v39 = vadd.f32 %v317_v37, %v310_v38 }
 0x202   :  { %v398_v40 = vmul.f32 -1.442695, %v318_v39 }
 0x204   :  { %415 = vpow2.f32 %v398_v40 }
 0x20a   :  { %v416_v41 = vpop.eup %415 }
 0x20b   :  { %v322_v42 = vadd.f32 1.0, %v416_v41 }
 0x20d   :  { %417 = vrcp.f32 %v322_v42  ;;  %v334_v46 = vand.u32 2147483648, %v322_v42  ;;  %v332_v48 = vand.u32 2147483647, %v322_v42  ;;  %vm328_vm3 = vweird.f32 %v322_v42 }
 0x20f   :  { %v335_v50 = vor.u32 1.1754944e-38, %v334_v46  ;;  %vm333_vm5 = vcmp.eq.f32.partialorder %v332_v48, 8.507059e+37 }
 0x213   :  { %v418_v43 = vpop.eup %417 }
 0x214   :  { %v324_v44 = vmul.f32 %v418_v43, %v322_v42  ;;  %vm329_vm2 = vweird.f32 %v418_v43 }
 0x215   :  { %vm330_vm4 = vmor %vm328_vm3, %vm329_vm2 }
 0x216   :  { %v325_v45 = vsub.f32 1.0, %v324_v44 }
 0x218   :  { %v326_v47 = vmul.f32 %v418_v43, %v325_v45 }
 0x21a   :  { %v327_v49 = vadd.f32 %v418_v43, %v326_v47 }
 0x21c   :  { %v331_v51 = vsel %vm330_vm4, %v418_v43, %v327_v49 }
 0x21d   :  { %v336_v52 = vsel %vm333_vm5, %v335_v50, %v331_v51 }
 0x21e   :  { %338 = vst [vmem:[#allocation3] sm:$0x1] %v336_v52 }
 0x21f   :  { %349 = dma.vmem_to_hbm [thread:$0]  %s345_s30, 16, %s347_s12, [#allocation4]  }
 0x220   :  { %443 = dma.done.wait [#allocation4], 16  }
 0x221   :  { %444 = vsyncadd [#allocation4], 4294967280 }
 0x222   :  { %354 = vsyncpa [#allocation4], 1 }

</bundles_post_ra>
